<compile_context>
chip_gen: v6e
topology: v6e:2x2x1
jax: 0.10.0
libtpu: 0.0.40
codegen_flags: <defaults>
</compile_context>

<pallas_src>
import functools

import jax
import jax.numpy as jnp
from jax import lax
from jax.experimental import pallas as pl
from jax.experimental.pallas import tpu as pltpu

_EPS = 1e-5
_VMEM_CAP_FALLBACK = 64 << 20  # v7x per-TC VMEM: safe lower bound on every chip.


def _layernorm_kernel(x_ref, w_ref, o_ref):
    # x_ref: (TM, dim) input tile, w_ref: (1, dim) scale, o_ref: (TM, dim) output.
    x = x_ref[...].astype(jnp.float32)
    inv_dim = jnp.float32(1.0 / x.shape[-1])
    # Fused single pass over the tile: sum and sum-of-squares together.
    s = jnp.sum(x, axis=-1, keepdims=True)
    sq = jnp.sum(x * x, axis=-1, keepdims=True)
    mean = s * inv_dim
    # E[x^2] - mean^2 can dip slightly negative in f32 — clamp before rsqrt.
    var = jnp.maximum(sq * inv_dim - mean * mean, 0.0)
    inv = lax.rsqrt(var + _EPS)
    o_ref[...] = (((x - mean) * inv) * w_ref[...]).astype(o_ref.dtype)


@functools.lru_cache(maxsize=None)
def _vmem_capacity_bytes() -> int:
    try:
        return int(pltpu.get_tpu_info().vmem_capacity_bytes)
    except Exception:
        return _VMEM_CAP_FALLBACK


def _round_up(x: int, m: int) -> int:
    return ((x + m - 1) // m) * m


def _pick_row_tile(rows: int, dim: int, in_bytes: int, out_bytes: int,
                   budget_bytes: int) -> int:
    """Largest row tile (multiple of 8, <=1024) whose pipelined footprint fits budget.

    Per grid step the working set is approximately:
      2*tm*dim*in_bytes   (double-buffered input)
    + 2*tm*dim*out_bytes  (double-buffered output)
    + 2*tm*dim*4          (in-kernel f32 upcast / normalized temporaries)
    + dim*4               (weight, negligible)
    """
    per_row = dim * (2 * in_bytes + 2 * out_bytes + 2 * 4)
    tm = budget_bytes // max(per_row, 1)
    tm = max(8, min(1024, (int(tm) // 8) * 8))
    # Never bigger than the (8-padded) row count.
    tm = min(tm, max(8, _round_up(rows, 8)))
    return tm


@functools.partial(jax.jit, static_argnames=("tm", "vmem_limit_bytes", "out_dtype"))
def _layernorm_pallas(x2d, weight2d, *, tm, vmem_limit_bytes, out_dtype):
    rows, dim = x2d.shape
    in_bytes = x2d.dtype.itemsize
    out_bytes = jnp.dtype(out_dtype).itemsize
    grid = (pl.cdiv(rows, tm),)

    return pl.pallas_call(
        _layernorm_kernel,
        out_shape=jax.ShapeDtypeStruct((rows, dim), out_dtype),
        grid=grid,
        in_specs=[
            pl.BlockSpec((tm, dim), lambda i: (i, 0)),
            pl.BlockSpec((1, dim), lambda i: (0, 0)),
        ],
        out_specs=pl.BlockSpec((tm, dim), lambda i: (i, 0)),
        compiler_params=pltpu.CompilerParams(
            dimension_semantics=("parallel",),
            vmem_limit_bytes=vmem_limit_bytes,
        ),
        cost_estimate=pl.CostEstimate(
            flops=6 * rows * dim,
            bytes_accessed=rows * dim * (in_bytes + out_bytes) + 4 * dim,
            transcendentals=rows,
        ),
    )(x2d, weight2d)


class LayerNorm:
    """JAX/Pallas port of the PyTorch LayerNorm module (normalize last dim, scale only)."""

    def __init__(self, dim, out_dtype=jnp.float32):
        self.dim = dim
        self.weight = jnp.ones((dim,), dtype=jnp.float32)
        # f32 output matches the PyTorch `.float()` contract; pass bf16 here only
        # as an opt-in bandwidth saving when the consumer casts immediately anyway.
        self.out_dtype = jnp.dtype(out_dtype)

    def __call__(self, x):
        dim = self.dim
        lead = x.shape[:-1]
        rows = 1
        for s in lead:
            rows *= s
        x2d = x.reshape(rows, dim)
        w2d = self.weight.astype(jnp.float32).reshape(1, dim)

        cap = _vmem_capacity_bytes()
        # ~50% of physical VMEM for the pipelined working set; scoped limit at 75%
        # (still under physical on v7x, unlocks >=512-row tiles on v5e/v6e).
        budget = cap // 2
        vmem_limit = int(min((cap * 3) // 4, 96 << 20))
        tm = _pick_row_tile(rows, dim, x2d.dtype.itemsize,
                            self.out_dtype.itemsize, budget)

        out = _layernorm_pallas(
            x2d, w2d, tm=tm, vmem_limit_bytes=vmem_limit, out_dtype=self.out_dtype)
        return out.reshape(*lead, dim)


def _reference(x, weight, eps=_EPS):
    x = x.astype(jnp.float32)
    mean = jnp.mean(x, axis=-1, keepdims=True)
    var = jnp.mean((x - mean) ** 2, axis=-1, keepdims=True)
    xn = (x - mean) / jnp.sqrt(var + eps)
    return xn * weight.reshape((1,) * (x.ndim - 1) + (-1,))


if __name__ == "__main__":
    key = jax.random.PRNGKey(0)
    batch, seq, hidden = 2, 8, 32
    kx, _ = jax.random.split(key)
    x = jax.random.normal(kx, (batch, seq, hidden), dtype=jnp.float32)

    ln = LayerNorm(hidden)
    # Exercise the scale path with a deterministic non-trivial weight
    # (module init is ones; weight is a learnable parameter in the original).
    ln.weight = jnp.linspace(0.5, 1.5, hidden, dtype=jnp.float32)

    out = jax.block_until_ready(ln(x))
    ref = _reference(x, ln.weight)

    assert out.shape == (batch, seq, hidden)
    assert out.dtype == jnp.float32
    assert jnp.allclose(out, ref, atol=1e-5, rtol=1e-5)

    print("KERNEL_OK")
</pallas_src>

<mosaic_0001>
module attributes {stable_mosaic.version = 11 : i64} {
  func.func @_layernorm_kernel(%arg0: i32, %arg1: memref<16x32xf32, #tpu.memory_space<vmem>>, %arg2: memref<1x32xf32, #tpu.memory_space<vmem>>, %arg3: memref<16x32xf32, #tpu.memory_space<vmem>>) attributes {dimension_semantics = [#tpu.dimension_semantics<parallel>], iteration_bounds = array<i64: 1>, scalar_prefetch = 0 : i64, scratch_operands = 0 : i64, tpu.core_type = #tpu.core_type<tc>, window_params = [{transform_indices = @transform_0, window_bounds = array<i64: 16, 32>}, {pipeline_mode = #tpu.pipeline_mode<synchronous>, transform_indices = @transform_1, window_bounds = array<i64: 1, 32>}, {transform_indices = @transform_2, window_bounds = array<i64: 16, 32>}]} {
    %c0 = arith.constant 0 : index
    %c0_0 = arith.constant 0 : index
    %0 = vector.load %arg1[%c0, %c0_0] : memref<16x32xf32, #tpu.memory_space<vmem>>, vector<16x32xf32>
    %cst = arith.constant dense<0.000000e+00> : vector<16xf32>
    %1 = vector.multi_reduction <add>, %0, %cst [1] : vector<16x32xf32> to vector<16xf32>
    %2 = vector.shape_cast %1 : vector<16xf32> to vector<16x1xf32>
    %3 = arith.mulf %0, %0 : vector<16x32xf32>
    %cst_1 = arith.constant dense<0.000000e+00> : vector<16xf32>
    %4 = vector.multi_reduction <add>, %3, %cst_1 [1] : vector<16x32xf32> to vector<16xf32>
    %5 = vector.shape_cast %4 : vector<16xf32> to vector<16x1xf32>
    %cst_2 = arith.constant 3.125000e-02 : f32
    %6 = vector.broadcast %cst_2 : f32 to vector<16x1xf32>
    %7 = arith.mulf %2, %6 : vector<16x1xf32>
    %cst_3 = arith.constant 3.125000e-02 : f32
    %8 = vector.broadcast %cst_3 : f32 to vector<16x1xf32>
    %9 = arith.mulf %5, %8 : vector<16x1xf32>
    %10 = arith.mulf %7, %7 : vector<16x1xf32>
    %11 = arith.subf %9, %10 : vector<16x1xf32>
    %cst_4 = arith.constant 0.000000e+00 : f32
    %12 = vector.broadcast %cst_4 : f32 to vector<16x1xf32>
    %13 = arith.maximumf %11, %12 : vector<16x1xf32>
    %cst_5 = arith.constant 9.99999974E-6 : f32
    %14 = vector.broadcast %cst_5 : f32 to vector<16x1xf32>
    %15 = arith.addf %13, %14 : vector<16x1xf32>
    %16 = math.rsqrt %15 : vector<16x1xf32>
    %17 = vector.broadcast %7 : vector<16x1xf32> to vector<16x32xf32>
    %18 = arith.subf %0, %17 : vector<16x32xf32>
    %19 = vector.broadcast %16 : vector<16x1xf32> to vector<16x32xf32>
    %20 = arith.mulf %18, %19 : vector<16x32xf32>
    %c0_6 = arith.constant 0 : index
    %c0_7 = arith.constant 0 : index
    %21 = vector.load %arg2[%c0_6, %c0_7] : memref<1x32xf32, #tpu.memory_space<vmem>>, vector<1x32xf32>
    %22 = vector.broadcast %21 : vector<1x32xf32> to vector<16x32xf32>
    %23 = arith.mulf %20, %22 : vector<16x32xf32>
    %c0_8 = arith.constant 0 : index
    %c0_9 = arith.constant 0 : index
    %24 = vector.load %arg3[%c0_8, %c0_9] : memref<16x32xf32, #tpu.memory_space<vmem>>, vector<16x32xf32>
    tpu.vector_store %arg3[%c0_8, %c0_9], %23 {strides = array<i32>} : memref<16x32xf32, #tpu.memory_space<vmem>>, vector<16x32xf32>,
    return
  }
  func.func @transform_0(%arg0: i32) -> (i32, i32) {
    %c0_i32 = arith.constant 0 : i32
    %c0_i32_0 = arith.constant 0 : i32
    return %arg0, %c0_i32 : i32, i32
  }
  func.func @transform_1(%arg0: i32) -> (i32, i32) {
    %c0_i32 = arith.constant 0 : i32
    %c0_i32_0 = arith.constant 0 : i32
    %c0_i32_1 = arith.constant 0 : i32
    return %c0_i32, %c0_i32_0 : i32, i32
  }
  func.func @transform_2(%arg0: i32) -> (i32, i32) {
    %c0_i32 = arith.constant 0 : i32
    %c0_i32_0 = arith.constant 0 : i32
    return %arg0, %c0_i32 : i32, i32
  }
}

</mosaic_0001>

<bundles_post_ra>
// kernel: _layernorm_pallas.1
= control target key start
LH: loop header
LB: loop body
LE: loop exit
PB: predicated region body
PF: predicated region fallthrough
CT: control target
= control target key end

     0   :  { %7 = vsyncpa [#allocation3], 0  ;;  %s182_s0 = inlined_call_operand.hbm [shape: f32[16,32], index: 0, kind: input, shape index: {}]   ;;  %s183_s1 = inlined_call_operand.vmem [shape: f32[1,32], index: 1, kind: input, shape index: {}]   ;;  %s184_s2 = inlined_call_operand.hbm [shape: f32[16,32], index: 2, kind: output, shape index: {}]  }
   0x1   :  { %8 = vsyncpa [#allocation4], 0  ;;  %s142_s9 = smov [#allocation2]  }
   0x2   :  { %s14_s10 = sshll.u32 %s142_s9, 4  ;;  %s15_s10 = int_to_ptr.vmem [resolvable:$true] %s14_s10 }
   0x3   :  { %s106_s11 = scalar_lea.vmem %s15_s10, 256  ;;  %p111_p1 = scmp.lt.s32.totalorder %s15_s10, %s15_s10 }
   0x4   :  { %p107_p0 = scmp.ne.s32.totalorder %s15_s10, %s106_s11  ;;  %p112_p2 = scmp.lt.s32.totalorder %s106_s11, %s106_s11 }
   0x6   :  { %p113_p3 = por %p112_p2, %p111_p1 }
   0x8   :  { %p114_p4 = pnand %p113_p3, %p107_p0 }
   0xa   :  { %117 = shalt.err (!%p114_p4)
}
   0xb   :  { %s143_s12 = smov 128   ;;  %s144_s13 = smov 8  }
   0xc   :  { %20 = dma.hbm_to_vmem [thread:$0]  %s182_s0, 256, %s15_s10, [#allocation3], %s143_s12, %s143_s12, %s144_s13  }
   0xd   :  { %138 = dma.done.wait [#allocation3], 256  }
   0xe   :  { %139 = vsyncadd [#allocation3], 4294967040  ;;  %vm28_vm0 = vcmask 261120   ;;  %v26_v0 = vld [vmem:[#allocation2] sm:$0xff]  ;;  %v27_v1 = vld [vmem:[#allocation2 + $0x8] sm:$0xff]  ;;  %s145_s17 = smov [#allocation5]  }
   0xf   :  { %v29_v2 = vsel %vm28_vm0, %v26_v0, 0.0  ;;  %v35_v3 = vmul.f32 %v26_v0, %v26_v0  ;;  %v36_v4 = vmul.f32 %v27_v1, %v27_v1  ;;  %v32_v6 = vsel %vm28_vm0, %v27_v1, 0.0  ;;  %v89_v26 = vld [vmem:[%s183_s1] ss:$0 sm:$0xff]  ;;  %s77_s18 = sshll.u32 %s145_s17, 4  ;;  %s78_s18 = int_to_ptr.vmem [resolvable:$true] %s77_s18 }
  0x10   :  { %30 = vadd.xlane.f32.xlu0 %v29_v2  ;;  %s118_s19 = scalar_lea.vmem %s78_s18, 256  ;;  %p123_p6 = scmp.lt.s32.totalorder %s78_s18, %s78_s18 }
  0x11   :  { %v37_v5 = vsel %vm28_vm0, %v35_v3, 0.0  ;;  %v40_v7 = vsel %vm28_vm0, %v36_v4, 0.0  ;;  %p119_p5 = scmp.ne.s32.totalorder %s78_s18, %s118_s19  ;;  %p124_p7 = scmp.lt.s32.totalorder %s118_s19, %s118_s19 }
  0x12   :  { %38 = vadd.xlane.f32.xlu1 %v37_v5 }
  0x13   :  { %p125_p8 = por %p124_p7, %p123_p6 }
  0x14   :  { %33 = vadd.xlane.f32.xlu0 %v32_v6 }
  0x15   :  { %p126_p9 = pnand %p125_p8, %p119_p5 }
  0x16   :  { %41 = vadd.xlane.f32.xlu1 %v40_v7 }
  0x99   :  { %v31_v8 = vpop.xlane.xlu0 %30 }
  0x9a   :  { %v43_v9 = vmul.f32 0.03125, %v31_v8 }
  0x9b   :  { %v39_v10 = vpop.xlane.xlu1 %38 }
  0x9c   :  { %v47_v11 = vmul.f32 %v43_v9, %v43_v9  ;;  %v45_v12 = vmul.f32 0.03125, %v39_v10  ;;  %v57_v24 = vsub.f32 %v26_v0, %v43_v9 }
  0x9d   :  { %v34_v13 = vpop.xlane.xlu0 %33 }
  0x9e   :  { %v49_v14 = vsub.f32 %v45_v12, %v47_v11  ;;  %v44_v15 = vmul.f32 0.03125, %v34_v13 }
  0x9f   :  { %v42_v16 = vpop.xlane.xlu1 %41 }
  0xa0   :  { %v51_v17 = vmax.f32 %v49_v14, 0.0  ;;  %v48_v18 = vmul.f32 %v44_v15, %v44_v15  ;;  %v46_v19 = vmul.f32 0.03125, %v42_v16  ;;  %v58_v28 = vsub.f32 %v27_v1, %v44_v15 }
  0xa2   :  { %v53_v20 = vadd.f32 1e-05, %v51_v17  ;;  %v50_v21 = vsub.f32 %v46_v19, %v48_v18 }
  0xa4   :  { %94 = vrsqrt.f32 %v53_v20  ;;  %v52_v22 = vmax.f32 %v50_v21, 0.0 }
  0xa6   :  { %v54_v23 = vadd.f32 1e-05, %v52_v22 }
  0xa8   :  { %96 = vrsqrt.f32 %v54_v23 }
  0xb1   :  { %v95_v25 = vpop.eup %94 }
  0xb2   :  { %v59_v27 = vmul.f32 %v95_v25, %v57_v24 }
  0xb4   :  { %v68_v29 = vmul.f32 %v89_v26, %v59_v27 }
  0xb5   :  { %v97_v30 = vpop.eup %96 }
  0xb6   :  { %v60_v31 = vmul.f32 %v97_v30, %v58_v28  ;;  %70 = vst.msk [vmem:[#allocation5] sm:$0xff] %vm28_vm0, %v68_v29 }
  0xb8   :  { %v69_v32 = vmul.f32 %v89_v26, %v60_v31 }
  0xba   :  { %71 = vst.msk [vmem:[#allocation5 + $0x8] sm:$0xff] %vm28_vm0, %v69_v32 }
  0xbb   :  { %129 = shalt.err (!%p126_p9)
}
  0xbc   :  { %83 = dma.vmem_to_hbm [thread:$0]  %s78_s18, 256, %s184_s2, [#allocation4], %s143_s12, %s143_s12, %s144_s13  }
  0xbd   :  { %140 = dma.done.wait [#allocation4], 256  }
  0xbe   :  { %141 = vsyncadd [#allocation4], 4294967040 }
  0xbf   :  { %87 = vsyncpa [#allocation3], 1 }
  0xc0   :  { %88 = vsyncpa [#allocation4], 1 }

</bundles_post_ra>
